<compile_context>
chip_gen: v7x
topology: tpu7x:2x2x1
jax: 0.10.0
libtpu: 0.0.40
codegen_flags: <defaults>
</compile_context>

<pallas_src>
import jax
import jax.numpy as jnp
from jax.experimental import pallas as pl
from jax.experimental.pallas import tpu as pltpu


EMBED_DIM = 50
LAYERS = [128, 64, 32]          # hidden layer widths
IN_DIM = 2 * EMBED_DIM          # 100 after concat
MAX_BATCH_TILE = 512            # lane-aligned batch tile (multiple of 128)


def ncf_mlp_kernel(x_ref,
                   w1_ref, b1_ref,
                   w2_ref, b2_ref,
                   w3_ref, b3_ref,
                   wf_ref, bf_ref,
                   o_ref):
    # x_ref: (IN_DIM, tb) — batch on the lane axis.
    x = x_ref[...]

    # MLP: Linear -> ReLU (Dropout is identity at inference) x 3.
    h = jnp.dot(w1_ref[...], x, preferred_element_type=jnp.float32) + b1_ref[...]
    h = jnp.maximum(h, 0.0)                                   # (128, tb)
    h = jnp.dot(w2_ref[...], h, preferred_element_type=jnp.float32) + b2_ref[...]
    h = jnp.maximum(h, 0.0)                                   # (64, tb)
    h = jnp.dot(w3_ref[...], h, preferred_element_type=jnp.float32) + b3_ref[...]
    h = jnp.maximum(h, 0.0)                                   # (32, tb)

    # Final Linear to one feature, then clamp to [0, 5]. Lane-dense (1, tb) store.
    out = jnp.dot(wf_ref[...], h, preferred_element_type=jnp.float32) + bf_ref[...]
    o_ref[...] = jnp.clip(out, 0.0, 5.0)


def ncf_forward(user_input, item_input, params, *, batch_tile=MAX_BATCH_TILE):
    """Full NCF forward. Embedding gathers + concat are glue (plain JAX, XLA
    fuses them); the MLP hot path (4 matmuls + ReLU + clamp) runs inside one
    Pallas kernel with batch on the lane axis."""
    user_table = params["user_embedding"]
    item_table = params["item_embedding"]

    u_emb = user_table[user_input]          # (B, E)
    i_emb = item_table[item_input]          # (B, E)
    B = u_emb.shape[0]

    # Lane-aligned batch tile; pad the batch up to a multiple of it.
    tb = min(batch_tile, max(128, ((B + 127) // 128) * 128))
    B_pad = ((B + tb - 1) // tb) * tb

    # Single (IN_DIM, B_pad) input: concat on features, transpose so batch is
    # on the lane axis, zero-pad the batch tail.
    x = jnp.concatenate([u_emb, i_emb], axis=-1)            # (B, 2E)
    xT = x.T                                                 # (2E, B)
    if B_pad != B:
        xT = jnp.pad(xT, ((0, 0), (0, B_pad - B)))

    grid = (B_pad // tb,)

    def batch_map(i):
        return (0, i)

    def rep_map(i):
        return (0, 0)

    w1, b1 = params["w1"], params["b1"]
    w2, b2 = params["w2"], params["b2"]
    w3, b3 = params["w3"], params["b3"]
    wf, bf = params["wf"], params["bf"]

    out = pl.pallas_call(
        ncf_mlp_kernel,
        out_shape=jax.ShapeDtypeStruct((1, B_pad), jnp.float32),
        grid_spec=pltpu.PrefetchScalarGridSpec(
            num_scalar_prefetch=0,
            grid=grid,
            in_specs=[
                pl.BlockSpec((IN_DIM, tb), batch_map),               # xT
                pl.BlockSpec((LAYERS[0], IN_DIM), rep_map),          # w1 (out,in)
                pl.BlockSpec((LAYERS[0], 1), rep_map),               # b1
                pl.BlockSpec((LAYERS[1], LAYERS[0]), rep_map),       # w2
                pl.BlockSpec((LAYERS[1], 1), rep_map),               # b2
                pl.BlockSpec((LAYERS[2], LAYERS[1]), rep_map),       # w3
                pl.BlockSpec((LAYERS[2], 1), rep_map),               # b3
                pl.BlockSpec((1, LAYERS[2]), rep_map),               # wf
                pl.BlockSpec((1, 1), rep_map),                       # bf
            ],
            out_specs=pl.BlockSpec((1, tb), batch_map),              # lane-dense
        ),
        compiler_params=pltpu.CompilerParams(
            dimension_semantics=("parallel",)),
    )(xT, w1, b1, w2, b2, w3, b3, wf, bf)

    # torch's output.squeeze() -> (B,) ; drop batch padding.
    return out.reshape(B_pad)[:B]


def init_params(key, num_users, num_items):
    """Deterministic parameter init mirroring nn.Embedding / nn.Linear shapes.
    Linear weights stored in PyTorch layout (out_features, in_features); biases
    stored as (out_features, 1) column vectors for lane-broadcast in-kernel."""
    ks = jax.random.split(key, 12)
    dims = [IN_DIM] + LAYERS

    def linear(kw, kb, fan_in, fan_out):
        bound = 1.0 / jnp.sqrt(fan_in)
        w = jax.random.uniform(kw, (fan_out, fan_in), jnp.float32, -bound, bound)
        b = jax.random.uniform(kb, (fan_out, 1), jnp.float32, -bound, bound)
        return w, b

    params = {
        "user_embedding": jax.random.normal(ks[0], (num_users, EMBED_DIM), jnp.float32),
        "item_embedding": jax.random.normal(ks[1], (num_items, EMBED_DIM), jnp.float32),
    }
    params["w1"], params["b1"] = linear(ks[2], ks[3], dims[0], dims[1])
    params["w2"], params["b2"] = linear(ks[4], ks[5], dims[1], dims[2])
    params["w3"], params["b3"] = linear(ks[6], ks[7], dims[2], dims[3])
    params["wf"], params["bf"] = linear(ks[8], ks[9], dims[3], 1)
    return params


def ncf_reference(user_input, item_input, params):
    """Pure-JAX reference for correctness checking (batch-major layout)."""
    u = params["user_embedding"][user_input]
    i = params["item_embedding"][item_input]
    x = jnp.concatenate([u, i], axis=-1)
    x = jnp.maximum(x @ params["w1"].T + params["b1"].T, 0.0)
    x = jnp.maximum(x @ params["w2"].T + params["b2"].T, 0.0)
    x = jnp.maximum(x @ params["w3"].T + params["b3"].T, 0.0)
    out = x @ params["wf"].T + params["bf"].T
    return jnp.clip(out, 0.0, 5.0).reshape(-1)


if __name__ == "__main__":
    key = jax.random.PRNGKey(0)
    num_users, num_items = 20, 30
    batch = 16

    pkey, ukey, ikey = jax.random.split(key, 3)
    params = init_params(pkey, num_users, num_items)

    user_input = jax.random.randint(ukey, (batch,), 0, num_users, dtype=jnp.int32)
    item_input = jax.random.randint(ikey, (batch,), 0, num_items, dtype=jnp.int32)

    out = ncf_forward(user_input, item_input, params)
    out = jax.block_until_ready(out)

    ref = ncf_reference(user_input, item_input, params)
    assert out.shape == (batch,)
    assert jnp.allclose(out, ref, atol=1e-5, rtol=1e-5), (out, ref)

    print("KERNEL_OK")
</pallas_src>

<mosaic_0001>
module attributes {stable_mosaic.version = 11 : i64} {
  func.func @ncf_mlp_kernel(%arg0: i32, %arg1: memref<100x128xf32, #tpu.memory_space<vmem>>, %arg2: memref<128x100xf32, #tpu.memory_space<vmem>>, %arg3: memref<128x1xf32, #tpu.memory_space<vmem>>, %arg4: memref<64x128xf32, #tpu.memory_space<vmem>>, %arg5: memref<64x1xf32, #tpu.memory_space<vmem>>, %arg6: memref<32x64xf32, #tpu.memory_space<vmem>>, %arg7: memref<32x1xf32, #tpu.memory_space<vmem>>, %arg8: memref<1x32xf32, #tpu.memory_space<vmem>>, %arg9: memref<1x1xf32, #tpu.memory_space<vmem>>, %arg10: memref<1x128xf32, #tpu.memory_space<vmem>>) attributes {dimension_semantics = [#tpu.dimension_semantics<parallel>], iteration_bounds = array<i64: 1>, scalar_prefetch = 0 : i64, scratch_operands = 0 : i64, tpu.core_type = #tpu.core_type<tc>, window_params = [{transform_indices = @transform_0, window_bounds = array<i64: 100, 128>}, {pipeline_mode = #tpu.pipeline_mode<synchronous>, transform_indices = @transform_1, window_bounds = array<i64: 128, 100>}, {pipeline_mode = #tpu.pipeline_mode<synchronous>, transform_indices = @transform_2, window_bounds = array<i64: 128, 1>}, {pipeline_mode = #tpu.pipeline_mode<synchronous>, transform_indices = @transform_3, window_bounds = array<i64: 64, 128>}, {pipeline_mode = #tpu.pipeline_mode<synchronous>, transform_indices = @transform_4, window_bounds = array<i64: 64, 1>}, {pipeline_mode = #tpu.pipeline_mode<synchronous>, transform_indices = @transform_5, window_bounds = array<i64: 32, 64>}, {pipeline_mode = #tpu.pipeline_mode<synchronous>, transform_indices = @transform_6, window_bounds = array<i64: 32, 1>}, {pipeline_mode = #tpu.pipeline_mode<synchronous>, transform_indices = @transform_7, window_bounds = array<i64: 1, 32>}, {pipeline_mode = #tpu.pipeline_mode<synchronous>, transform_indices = @transform_8, window_bounds = array<i64: 1, 1>}, {transform_indices = @transform_9, window_bounds = array<i64: 1, 128>}]} {
    %c0 = arith.constant 0 : index
    %c0_0 = arith.constant 0 : index
    %0 = vector.load %arg1[%c0, %c0_0] : memref<100x128xf32, #tpu.memory_space<vmem>>, vector<100x128xf32>
    %c0_1 = arith.constant 0 : index
    %c0_2 = arith.constant 0 : index
    %1 = vector.load %arg2[%c0_1, %c0_2] : memref<128x100xf32, #tpu.memory_space<vmem>>, vector<128x100xf32>
    %cst = arith.constant dense<0.000000e+00> : vector<128x128xf32>
    %2 = tpu.matmul %1, %0, %cst {dimension_numbers = #tpu.dot_dimension_numbers<[1], [0], [0], [1], [0, 0, 1, 1], [], []>} : vector<128x100xf32>, vector<100x128xf32>, vector<128x128xf32> -> vector<128x128xf32>
    %c0_3 = arith.constant 0 : index
    %c0_4 = arith.constant 0 : index
    %3 = vector.load %arg3[%c0_3, %c0_4] : memref<128x1xf32, #tpu.memory_space<vmem>>, vector<128x1xf32>
    %4 = vector.broadcast %3 : vector<128x1xf32> to vector<128x128xf32>
    %5 = arith.addf %2, %4 : vector<128x128xf32>
    %cst_5 = arith.constant 0.000000e+00 : f32
    %6 = vector.broadcast %cst_5 : f32 to vector<128x128xf32>
    %7 = arith.maximumf %5, %6 : vector<128x128xf32>
    %c0_6 = arith.constant 0 : index
    %c0_7 = arith.constant 0 : index
    %8 = vector.load %arg4[%c0_6, %c0_7] : memref<64x128xf32, #tpu.memory_space<vmem>>, vector<64x128xf32>
    %cst_8 = arith.constant dense<0.000000e+00> : vector<64x128xf32>
    %9 = tpu.matmul %8, %7, %cst_8 {dimension_numbers = #tpu.dot_dimension_numbers<[1], [0], [0], [1], [0, 0, 1, 1], [], []>} : vector<64x128xf32>, vector<128x128xf32>, vector<64x128xf32> -> vector<64x128xf32>
    %c0_9 = arith.constant 0 : index
    %c0_10 = arith.constant 0 : index
    %10 = vector.load %arg5[%c0_9, %c0_10] : memref<64x1xf32, #tpu.memory_space<vmem>>, vector<64x1xf32>
    %11 = vector.broadcast %10 : vector<64x1xf32> to vector<64x128xf32>
    %12 = arith.addf %9, %11 : vector<64x128xf32>
    %cst_11 = arith.constant 0.000000e+00 : f32
    %13 = vector.broadcast %cst_11 : f32 to vector<64x128xf32>
    %14 = arith.maximumf %12, %13 : vector<64x128xf32>
    %c0_12 = arith.constant 0 : index
    %c0_13 = arith.constant 0 : index
    %15 = vector.load %arg6[%c0_12, %c0_13] : memref<32x64xf32, #tpu.memory_space<vmem>>, vector<32x64xf32>
    %cst_14 = arith.constant dense<0.000000e+00> : vector<32x128xf32>
    %16 = tpu.matmul %15, %14, %cst_14 {dimension_numbers = #tpu.dot_dimension_numbers<[1], [0], [0], [1], [0, 0, 1, 1], [], []>} : vector<32x64xf32>, vector<64x128xf32>, vector<32x128xf32> -> vector<32x128xf32>
    %c0_15 = arith.constant 0 : index
    %c0_16 = arith.constant 0 : index
    %17 = vector.load %arg7[%c0_15, %c0_16] : memref<32x1xf32, #tpu.memory_space<vmem>>, vector<32x1xf32>
    %18 = vector.broadcast %17 : vector<32x1xf32> to vector<32x128xf32>
    %19 = arith.addf %16, %18 : vector<32x128xf32>
    %cst_17 = arith.constant 0.000000e+00 : f32
    %20 = vector.broadcast %cst_17 : f32 to vector<32x128xf32>
    %21 = arith.maximumf %19, %20 : vector<32x128xf32>
    %c0_18 = arith.constant 0 : index
    %c0_19 = arith.constant 0 : index
    %22 = vector.load %arg8[%c0_18, %c0_19] : memref<1x32xf32, #tpu.memory_space<vmem>>, vector<1x32xf32>
    %cst_20 = arith.constant dense<0.000000e+00> : vector<1x128xf32>
    %23 = tpu.matmul %22, %21, %cst_20 {dimension_numbers = #tpu.dot_dimension_numbers<[1], [0], [0], [1], [0, 0, 1, 1], [], []>} : vector<1x32xf32>, vector<32x128xf32>, vector<1x128xf32> -> vector<1x128xf32>
    %c0_21 = arith.constant 0 : index
    %c0_22 = arith.constant 0 : index
    %24 = vector.load %arg9[%c0_21, %c0_22] : memref<1x1xf32, #tpu.memory_space<vmem>>, vector<1x1xf32>
    %25 = vector.broadcast %24 : vector<1x1xf32> to vector<1x128xf32>
    %26 = arith.addf %23, %25 : vector<1x128xf32>
    %cst_23 = arith.constant 0.000000e+00 : f32
    %cst_24 = arith.constant 5.000000e+00 : f32
    %27 = vector.broadcast %cst_23 : f32 to vector<1x128xf32>
    %28 = arith.maximumf %27, %26 : vector<1x128xf32>
    %29 = vector.broadcast %cst_24 : f32 to vector<1x128xf32>
    %30 = arith.minimumf %29, %28 : vector<1x128xf32>
    %c0_25 = arith.constant 0 : index
    %c0_26 = arith.constant 0 : index
    %31 = vector.load %arg10[%c0_25, %c0_26] : memref<1x128xf32, #tpu.memory_space<vmem>>, vector<1x128xf32>
    tpu.vector_store %arg10[%c0_25, %c0_26], %30 {strides = array<i32>} : memref<1x128xf32, #tpu.memory_space<vmem>>, vector<1x128xf32>,
    return
  }
  func.func @transform_0(%arg0: i32) -> (i32, i32) {
    %c0_i32 = arith.constant 0 : i32
    %c0_i32_0 = arith.constant 0 : i32
    return %c0_i32, %arg0 : i32, i32
  }
  func.func @transform_1(%arg0: i32) -> (i32, i32) {
    %c0_i32 = arith.constant 0 : i32
    %c0_i32_0 = arith.constant 0 : i32
    %c0_i32_1 = arith.constant 0 : i32
    return %c0_i32, %c0_i32_0 : i32, i32
  }
  func.func @transform_2(%arg0: i32) -> (i32, i32) {
    %c0_i32 = arith.constant 0 : i32
    %c0_i32_0 = arith.constant 0 : i32
    %c0_i32_1 = arith.constant 0 : i32
    return %c0_i32, %c0_i32_0 : i32, i32
  }
  func.func @transform_3(%arg0: i32) -> (i32, i32) {
    %c0_i32 = arith.constant 0 : i32
    %c0_i32_0 = arith.constant 0 : i32
    %c0_i32_1 = arith.constant 0 : i32
    return %c0_i32, %c0_i32_0 : i32, i32
  }
  func.func @transform_4(%arg0: i32) -> (i32, i32) {
    %c0_i32 = arith.constant 0 : i32
    %c0_i32_0 = arith.constant 0 : i32
    %c0_i32_1 = arith.constant 0 : i32
    return %c0_i32, %c0_i32_0 : i32, i32
  }
  func.func @transform_5(%arg0: i32) -> (i32, i32) {
    %c0_i32 = arith.constant 0 : i32
    %c0_i32_0 = arith.constant 0 : i32
    %c0_i32_1 = arith.constant 0 : i32
    return %c0_i32, %c0_i32_0 : i32, i32
  }
  func.func @transform_6(%arg0: i32) -> (i32, i32) {
    %c0_i32 = arith.constant 0 : i32
    %c0_i32_0 = arith.constant 0 : i32
    %c0_i32_1 = arith.constant 0 : i32
    return %c0_i32, %c0_i32_0 : i32, i32
  }
  func.func @transform_7(%arg0: i32) -> (i32, i32) {
    %c0_i32 = arith.constant 0 : i32
    %c0_i32_0 = arith.constant 0 : i32
    %c0_i32_1 = arith.constant 0 : i32
    return %c0_i32, %c0_i32_0 : i32, i32
  }
  func.func @transform_8(%arg0: i32) -> (i32, i32) {
    %c0_i32 = arith.constant 0 : i32
    %c0_i32_0 = arith.constant 0 : i32
    %c0_i32_1 = arith.constant 0 : i32
    return %c0_i32, %c0_i32_0 : i32, i32
  }
  func.func @transform_9(%arg0: i32) -> (i32, i32) {
    %c0_i32 = arith.constant 0 : i32
    %c0_i32_0 = arith.constant 0 : i32
    return %c0_i32, %arg0 : i32, i32
  }
}

</mosaic_0001>

<bundles_post_ra>
// kernel: tpu_custom_call.1
= control target key start
LH: loop header
LB: loop body
LE: loop exit
PB: predicated region body
PF: predicated region fallthrough
CT: control target
= control target key end

     0   :  { %s1403_s0 = inlined_call_operand.vmem [shape: f32[100,128], index: 0, kind: input, shape index: {}]   ;;  %s1404_s1 = inlined_call_operand.vmem [shape: f32[128,100], index: 1, kind: input, shape index: {}]   ;;  %s1405_s2 = inlined_call_operand.vmem [shape: f32[128,1], index: 2, kind: input, shape index: {}]   ;;  %s1406_s3 = inlined_call_operand.vmem [shape: f32[64,128], index: 3, kind: input, shape index: {}]   ;;  %s1407_s4 = inlined_call_operand.vmem [shape: f32[64,1], index: 4, kind: input, shape index: {}]   ;;  %s1408_s5 = inlined_call_operand.vmem [shape: f32[32,64], index: 5, kind: input, shape index: {}]   ;;  %s1409_s6 = inlined_call_operand.vmem [shape: f32[32,1], index: 6, kind: input, shape index: {}]   ;;  %s1410_s7 = inlined_call_operand.vmem [shape: f32[1,32], index: 7, kind: input, shape index: {}]   ;;  %s1411_s8 = inlined_call_operand.<no memory space> [shape: f32[1,1], index: 8, kind: input, shape index: {}]   ;;  %s1412_s9 = inlined_call_operand.hbm [shape: f32[1,128], index: 9, kind: output, shape index: {}]  }
   0x1   :  { %v14_v0 = vstv %s1411_s8 }
   0x2   :  { %15 = vst [vmem:[#allocation2] sm:$0x1] %v14_v0 }
   0x3   :  { %v35_v1 = vld [vmem:[%s1403_s0] sm:$0xff]  ;;  %v36_v2 = vld [vmem:[%s1403_s0 + $0x8] sm:$0xff]  ;;  %v37_v3 = vld [vmem:[%s1403_s0 + $0x10] sm:$0xff]  ;;  %v1103_v6 = vmov 0   ;;  %vm160_vm0 = vcmask 818176  }
   0x4   :  { %v994_v4 = vpack.c.bf16 %v36_v2, %v35_v1  ;;  %v38_v5 = vld [vmem:[%s1403_s0 + $0x18] sm:$0xff]  ;;  %1077 = vset.pattern.permute.xlu0 %v1103_v6  ;;  %1078 = vset.pattern.permute.xlu1 %v1103_v6  ;;  %v39_v8 = vld [vmem:[%s1403_s0 + $0x20] sm:$0xff]  ;;  %v40_v9 = vld [vmem:[%s1403_s0 + $0x28] sm:$0xff] }
   0x5   :  { %v998_v7 = vpack.c.bf16 %v38_v5, %v37_v3  ;;  %v48_v10 = vld [vmem:[%s1404_s1] sm:$0xff]  ;;  %v1002_v11 = vpack.c.bf16 %v40_v9, %v39_v8  ;;  %v41_v12 = vld [vmem:[%s1403_s0 + $0x30] sm:$0xff]  ;;  %v42_v13 = vld [vmem:[%s1403_s0 + $0x38] sm:$0xff] }
   0x6   :  { %995 = vmatprep.subr.bf16.mxu0 %v994_v4  ;;  %893 = vmatprep.mubr.msk.f32.mxu0 %vm160_vm0, %v48_v10  ;;  %v1006_v14 = vpack.c.bf16 %v42_v13, %v41_v12  ;;  %v64_v15 = vld [vmem:[%s1405_s2] sm:$0xff]  ;;  %v44_v17 = vld [vmem:[%s1403_s0 + $0x48] sm:$0xff]  ;;  %v66_v18 = vld [vmem:[%s1405_s2 + $0x10] sm:$0xff] }
   0x7   :  { %997 = vmatpush3.bf16.msra.mxu0 %v994_v4  ;;  %v43_v16 = vld [vmem:[%s1403_s0 + $0x40] sm:$0xff]  ;;  %82 = vperm.xlu0 %1077, %v64_v15   ;;  %v65_v19 = vld [vmem:[%s1405_s2 + $0x8] sm:$0xff]  ;;  %v67_v20 = vld [vmem:[%s1405_s2 + $0x18] sm:$0xff] }
   0x8   :  { %999 = vmatprep.subr.bf16.mxu0 %v998_v7  ;;  %92 = vperm.xlu1 %1078, %v66_v18   ;;  %v1010_v21 = vpack.c.bf16 %v44_v17, %v43_v16  ;;  %v45_v22 = vld [vmem:[%s1403_s0 + $0x50] sm:$0xff]  ;;  %v46_v23 = vld [vmem:[%s1403_s0 + $0x58] sm:$0xff]  ;;  %v68_v24 = vld [vmem:[%s1405_s2 + $0x20] sm:$0xff] }
   0x9   :  { %v69_v25 = vld [vmem:[%s1405_s2 + $0x28] sm:$0xff]  ;;  %v1014_v26 = vpack.c.bf16 %v46_v23, %v45_v22  ;;  %v70_v27 = vld [vmem:[%s1405_s2 + $0x30] sm:$0xff] }
   0xb   :  { %1001 = vmatpush3.bf16.msra.mxu0 %v998_v7  ;;  %87 = vperm.xlu0 %1077, %v65_v19  }
   0xc   :  { %1003 = vmatprep.subr.bf16.mxu0 %v1002_v11  ;;  %97 = vperm.xlu1 %1078, %v67_v20  }
   0xf   :  { %1005 = vmatpush3.bf16.msra.mxu0 %v1002_v11  ;;  %102 = vperm.xlu0 %1077, %v68_v24  }
  0x10   :  { %1007 = vmatprep.subr.bf16.mxu0 %v1006_v14  ;;  %107 = vperm.xlu1 %1078, %v69_v25  }
  0x13   :  { %1009 = vmatpush3.bf16.msra.mxu0 %v1006_v14 }
  0x14   :  { %1011 = vmatprep.subr.bf16.mxu0 %v1010_v21 }
  0x15   :  { %16 = vsyncpa [#allocation4], 0  ;;  %v71_v28 = vld [vmem:[%s1405_s2 + $0x38] sm:$0xff]  ;;  %v47_v29 = vld [vmem:[%s1403_s0 + $0x60] sm:$0xf]  ;;  %vm209_vm1 = vcmask 1043456   ;;  %112 = vperm.xlu0 %1077, %v70_v27  }
  0x16   :  { %v72_v30 = vld [vmem:[%s1405_s2 + $0x40] sm:$0xff]  ;;  %117 = vperm.xlu1 %1078, %v71_v28   ;;  %v73_v31 = vld [vmem:[%s1405_s2 + $0x48] sm:$0xff]  ;;  %v50_v33 = vld [vmem:[%s1404_s1 + $0x10] sm:$0xff]  ;;  %vm571_vm2 = vcmask 523264   ;;  %vm1105_vm3 = vmmov 0   ;;  %vm684_vm4 = vcmask 261120  }
  0x17   :  { %1013 = vmatpush3.bf16.msra.mxu0 %v1010_v21  ;;  %v49_v32 = vld [vmem:[%s1404_s1 + $0x8] sm:$0xff]  ;;  %v74_v34 = vld [vmem:[%s1405_s2 + $0x50] sm:$0xff]  ;;  %v75_v35 = vld [vmem:[%s1405_s2 + $0x58] sm:$0xff]  ;;  %s1107_s27 = smov [#allocation3]  }
  0x18   :  { %1015 = vmatprep.subr.bf16.mxu0 %v1014_v26  ;;  %v51_v36 = vld [vmem:[%s1404_s1 + $0x18] sm:$0xff]  ;;  %v52_v37 = vld [vmem:[%s1404_s1 + $0x20] sm:$0xff]  ;;  %v77_v39 = vld [vmem:[%s1405_s2 + $0x68] sm:$0xff]  ;;  %s767_s28 = sshll.u32 %s1107_s27, 4  ;;  %s768_s28 = int_to_ptr.vmem [resolvable:$true] %s767_s28 }
  0x19   :  { %122 = vperm.xlu0 %1077, %v72_v30   ;;  %v76_v38 = vld [vmem:[%s1405_s2 + $0x60] sm:$0xff]  ;;  %v53_v40 = vld [vmem:[%s1404_s1 + $0x28] sm:$0xff]  ;;  %v54_v41 = vld [vmem:[%s1404_s1 + $0x30] sm:$0xff]  ;;  %s1083_s29 = scalar_lea.vmem %s768_s28, 32  ;;  %p1084_p1 = scmp.lt.s32.totalorder %s768_s28, %s768_s28 }
  0x1a   :  { %127 = vperm.xlu1 %1078, %v73_v31   ;;  %v78_v42 = vld [vmem:[%s1405_s2 + $0x70] sm:$0xff]  ;;  %v79_v43 = vld [vmem:[%s1405_s2 + $0x78] sm:$0xff]  ;;  %v56_v45 = vld [vmem:[%s1404_s1 + $0x40] sm:$0xff] }
  0x1b   :  { %1017 = vmatpush3.bf16.msra.mxu0 %v1014_v26  ;;  %v55_v44 = vld [vmem:[%s1404_s1 + $0x38] sm:$0xff]  ;;  %v382_v46 = vld [vmem:[%s1407_s4] sm:$0xff]  ;;  %v383_v47 = vld [vmem:[%s1407_s4 + $0x8] sm:$0xff] }
  0x1c   :  { %891 = vmatprep.subr.msk.mxu0 %vm209_vm1, %v47_v29  ;;  %v57_v48 = vld [vmem:[%s1404_s1 + $0x48] sm:$0xff]  ;;  %v58_v49 = vld [vmem:[%s1404_s1 + $0x50] sm:$0xff]  ;;  %v385_v51 = vld [vmem:[%s1407_s4 + $0x18] sm:$0xff] }
  0x1d   :  { %132 = vperm.xlu0 %1077, %v74_v34   ;;  %v384_v50 = vld [vmem:[%s1407_s4 + $0x10] sm:$0xff]  ;;  %v59_v52 = vld [vmem:[%s1404_s1 + $0x58] sm:$0xff]  ;;  %v60_v53 = vld [vmem:[%s1404_s1 + $0x60] sm:$0xff] }
  0x1e   :  { %137 = vperm.xlu1 %1078, %v75_v35   ;;  %v386_v54 = vld [vmem:[%s1407_s4 + $0x20] sm:$0xff]  ;;  %v387_v55 = vld [vmem:[%s1407_s4 + $0x28] sm:$0xff]  ;;  %v62_v57 = vld [vmem:[%s1404_s1 + $0x70] sm:$0xff] }
  0x1f   :  { %892 = vmatpush3.msk.msra.mxu0 %vm209_vm1, %v47_v29  ;;  %v61_v56 = vld [vmem:[%s1404_s1 + $0x68] sm:$0xff]  ;;  %v388_v58 = vld [vmem:[%s1407_s4 + $0x30] sm:$0xff]  ;;  %v389_v59 = vld [vmem:[%s1407_s4 + $0x38] sm:$0xff] }
  0x20   :  { %894 = vmatmul.mubr.msk.f32.vlgmr.msra.gmra.mrb[0].mxu0 %vm160_vm0, %v49_v32  ;;  %v63_v60 = vld [vmem:[%s1404_s1 + $0x78] sm:$0xff]  ;;  %v547_v61 = vld [vmem:[%s1409_s6] sm:$0xff]  ;;  %v548_v62 = vld [vmem:[%s1409_s6 + $0x8] sm:$0xff]  ;;  %s1079_s1 = scalar_lea.vmem %s768_s28, 16 }
  0x21   :  { %896 = vmatprep.mubr.msk.f32.mxu0 %vm160_vm0, %v50_v33  ;;  %142 = vperm.xlu0 %1077, %v76_v38   ;;  %v549_v63 = vld [vmem:[%s1409_s6 + $0x10] sm:$0xff]  ;;  %v550_v0 = vld [vmem:[%s1409_s6 + $0x18] sm:$0xff]  ;;  %v674_v1 = vld [vmem:[#allocation2] sm:$0x1]  ;;  %p1080_p0 = scmp.ne.s32.totalorder %s768_s28, %s1079_s1  ;;  %p1085_p2 = scmp.lt.s32.totalorder %s1083_s29, %s1079_s1 }
  0x22   :  { %147 = vperm.xlu1 %1078, %v77_v39   ;;  %v374_v2 = vld [vmem:[%s1406_s3] sm:$0xff] }
  0x23   :  { %949 = vmatprep.mubr.f32.mxu1 %v374_v2  ;;  %p1086_p3 = por %p1085_p2, %p1084_p1 }
  0x24   :  { %897 = vmatmul.mubr.msk.f32.gmra.mrb[2].mxu0 %vm160_vm0, %v51_v36 }
  0x25   :  { %899 = vmatprep.mubr.msk.f32.mxu0 %vm160_vm0, %v52_v37  ;;  %152 = vperm.xlu0 %1077, %v78_v42   ;;  %p1087_p4 = pnand %p1086_p3, %p1080_p0 }
  0x26   :  { %157 = vperm.xlu1 %1078, %v79_v43  }
  0x28   :  { %900 = vmatmul.mubr.msk.f32.gmra.mrb[4].mxu0 %vm160_vm0, %v53_v40 }
  0x29   :  { %902 = vmatprep.mubr.msk.f32.mxu0 %vm160_vm0, %v54_v41  ;;  %392 = vperm.xlu0 %1077, %v382_v46  }
  0x2a   :  { %397 = vperm.xlu1 %1078, %v383_v47  }
  0x2c   :  { %903 = vmatmul.mubr.msk.f32.gmra.mrb[6].mxu0 %vm160_vm0, %v55_v44 }
  0x2d   :  { %905 = vmatprep.mubr.msk.f32.mxu0 %vm160_vm0, %v56_v45  ;;  %402 = vperm.xlu0 %1077, %v384_v50  }
  0x2e   :  { %407 = vperm.xlu1 %1078, %v385_v51  }
  0x30   :  { %906 = vmatmul.mubr.msk.f32.gmra.mrb[8].mxu0 %vm160_vm0, %v57_v48 }
  0x31   :  { %908 = vmatprep.mubr.msk.f32.mxu0 %vm160_vm0, %v58_v49  ;;  %412 = vperm.xlu0 %1077, %v386_v54  }
  0x32   :  { %417 = vperm.xlu1 %1078, %v387_v55  }
  0x34   :  { %909 = vmatmul.mubr.msk.f32.gmra.mrb[10].mxu0 %vm160_vm0, %v59_v52 }
  0x35   :  { %911 = vmatprep.mubr.msk.f32.mxu0 %vm160_vm0, %v60_v53  ;;  %422 = vperm.xlu0 %1077, %v388_v58  }
  0x36   :  { %427 = vperm.xlu1 %1078, %v389_v59  }
  0x38   :  { %912 = vmatmul.mubr.msk.f32.gmra.mrb[12].mxu0 %vm160_vm0, %v61_v56 }
  0x39   :  { %914 = vmatprep.mubr.msk.f32.mxu0 %vm160_vm0, %v62_v57  ;;  %553 = vperm.xlu0 %1077, %v547_v61  }
  0x3a   :  { %558 = vperm.xlu1 %1078, %v548_v62  }
  0x3c   :  { %915 = vmatmul.mubr.msk.f32.gmra.mrb[14].mxu0 %vm160_vm0, %v63_v60 }
  0x3d   :  { %563 = vperm.xlu0 %1077, %v549_v63  }
  0x3e   :  { %568 = vperm.xlu1 %1078, %v550_v0  }
  0x41   :  { %677 = vperm.xlu0 %1077, %v674_v1  }
  0x86   :  { %v83_v4 = vpop.permute.xlu0 %82 }
  0x87   :  { %v93_v3 = vpop.permute.xlu1 %92 }
  0x8a   :  { %v88_v6 = vpop.permute.xlu0 %87 }
  0x8b   :  { %v98_v5 = vpop.permute.xlu1 %97 }
  0x8e   :  { %v103_v8 = vpop.permute.xlu0 %102 }
  0x8f   :  { %v108_v7 = vpop.permute.xlu1 %107 }
  0x94   :  { %v113_v17 = vpop.permute.xlu0 %112 }
  0x95   :  { %v118_v14 = vpop.permute.xlu1 %117 }
  0x98   :  { %v123_v30 = vpop.permute.xlu0 %122 }
  0x99   :  { %v128_v27 = vpop.permute.xlu1 %127 }
  0x9c   :  { %v133_v42 = vpop.permute.xlu0 %132 }
  0x9d   :  { %v138_v39 = vpop.permute.xlu1 %137 }
  0xa0   :  { %v143_v55 = vpop.permute.xlu0 %142 }
  0xa1   :  { %v148_v52 = vpop.permute.xlu1 %147 }
  0xa5   :  { %v158_v0 = vpop.permute.xlu1 %157 }
  0xf3   :  { %v895_v9 = vpop.f32.mrb[0].mxu0 }
  0xf4   :  { %v285_v10 = vadd.f32 %v895_v9, %v88_v6  ;;  %v279_v11 = vpop.f32.mrb[1].mxu0 }
  0xf5   :  { %v280_v12 = vadd.f32 %v279_v11, %v83_v4  ;;  %v375_v11 = vld [vmem:[%s1406_s3 + $0x8] sm:$0xff] }
  0xf6   :  { %v359_v13 = vmax.f32 %v285_v10, 0.0 }
  0xf7   :  { %v358_v15 = vmax.f32 %v280_v12, 0.0  ;;  %v898_v16 = vpop.f32.mrb[2].mxu0  ;;  %v376_v12 = vld [vmem:[%s1406_s3 + $0x10] sm:$0xff] }
  0xf8   :  { %v295_v18 = vadd.f32 %v898_v16, %v98_v5  ;;  %v289_v19 = vpop.f32.mrb[3].mxu0  ;;  %v380_v16 = vld [vmem:[%s1406_s3 + $0x30] sm:$0xff] }
  0xf9   :  { %v290_v20 = vadd.f32 %v289_v19, %v93_v3  ;;  %v1018_v21 = vpack.c.bf16 %v359_v13, %v358_v15  ;;  %v153_v3 = vpop.permute.xlu0 %152  ;;  %v377_v13 = vld [vmem:[%s1406_s3 + $0x18] sm:$0xff]  ;;  %v379_v15 = vld [vmem:[%s1406_s3 + $0x28] sm:$0xff]  ;;  %v398_v19 = vpop.permute.xlu1 %397 }
  0xfa   :  { %v361_v22 = vmax.f32 %v295_v18, 0.0  ;;  %v543_v18 = vld [vmem:[%s1408_s5] sm:$0xff] }
  0xfb   :  { %v360_v23 = vmax.f32 %v290_v20, 0.0  ;;  %v901_v24 = vpop.f32.mrb[4].mxu0  ;;  %1019 = vmatprep.subr.bf16.mxu1 %v1018_v21 }
  0xfc   :  { %v305_v25 = vadd.f32 %v901_v24, %v108_v7  ;;  %v299_v26 = vpop.f32.mrb[5].mxu0  ;;  %1021 = vmatpush3.bf16.msra.mxu1 %v1018_v21 }
  0xfd   :  { %v1022_v28 = vpack.c.bf16 %v361_v22, %v360_v23  ;;  %v300_v29 = vadd.f32 %v299_v26, %v103_v8  ;;  %v393_v20 = vpop.permute.xlu0 %392  ;;  %v408_v21 = vpop.permute.xlu1 %407 }
  0xfe   :  { %v363_v31 = vmax.f32 %v305_v25, 0.0 }
  0xff   :  { %v362_v32 = vmax.f32 %v300_v29, 0.0  ;;  %v904_v33 = vpop.f32.mrb[6].mxu0  ;;  %1023 = vmatprep.subr.bf16.mxu1 %v1022_v28 }
 0x100   :  { %v315_v34 = vadd.f32 %v904_v33, %v118_v14  ;;  %v309_v35 = vpop.f32.mrb[7].mxu0  ;;  %1025 = vmatpush3.bf16.msra.mxu1 %v1022_v28  ;;  %v378_v14 = vld [vmem:[%s1406_s3 + $0x20] sm:$0xff] }
 0x101   :  { %v1026_v36 = vpack.c.bf16 %v363_v31, %v362_v32  ;;  %v310_v37 = vadd.f32 %v309_v35, %v113_v17  ;;  %v381_v17 = vld [vmem:[%s1406_s3 + $0x38] sm:$0xff]  ;;  %v403_v23 = vpop.permute.xlu0 %402  ;;  %v418_v32 = vpop.permute.xlu1 %417 }
 0x102   :  { %v365_v38 = vmax.f32 %v315_v34, 0.0 }
 0x103   :  { %v364_v40 = vmax.f32 %v310_v37, 0.0  ;;  %v907_v41 = vpop.f32.mrb[8].mxu0  ;;  %1027 = vmatprep.subr.bf16.mxu1 %v1026_v36 }
 0x104   :  { %v325_v43 = vadd.f32 %v907_v41, %v128_v27  ;;  %v319_v44 = vpop.f32.mrb[9].mxu0  ;;  %1029 = vmatpush3.bf16.msra.mxu1 %v1026_v36 }
 0x105   :  { %v1030_v45 = vpack.c.bf16 %v365_v38, %v364_v40  ;;  %v320_v46 = vadd.f32 %v319_v44, %v123_v30  ;;  %v413_v35 = vpop.permute.xlu0 %412  ;;  %v428_v44 = vpop.permute.xlu1 %427 }
 0x106   :  { %v367_v47 = vmax.f32 %v325_v43, 0.0 }
 0x107   :  { %v366_v48 = vmax.f32 %v320_v46, 0.0  ;;  %v910_v49 = vpop.f32.mrb[10].mxu0  ;;  %1031 = vmatprep.subr.bf16.mxu1 %v1030_v45 }
 0x108   :  { %v335_v50 = vadd.f32 %v910_v49, %v138_v39  ;;  %v329_v51 = vpop.f32.mrb[11].mxu0  ;;  %1033 = vmatpush3.bf16.msra.mxu1 %v1030_v45 }
 0x109   :  { %v1034_v53 = vpack.c.bf16 %v367_v47, %v366_v48  ;;  %v330_v54 = vadd.f32 %v329_v51, %v133_v42  ;;  %v423_v47 = vpop.permute.xlu0 %422 }
 0x10a   :  { %v369_v56 = vmax.f32 %v335_v50, 0.0 }
 0x10b   :  { %v368_v57 = vmax.f32 %v330_v54, 0.0  ;;  %v913_v58 = vpop.f32.mrb[12].mxu0  ;;  %1035 = vmatprep.subr.bf16.mxu1 %v1034_v53 }
 0x10c   :  { %v345_v59 = vadd.f32 %v913_v58, %v148_v52  ;;  %v339_v60 = vpop.f32.mrb[13].mxu0  ;;  %1037 = vmatpush3.bf16.msra.mxu1 %v1034_v53  ;;  %v1104_v58 = vmov 0.0|0.0  }
 0x10d   :  { %v1038_v61 = vpack.c.bf16 %v369_v56, %v368_v57  ;;  %v340_v62 = vadd.f32 %v339_v60, %v143_v55  ;;  %v544_v55 = vld [vmem:[%s1408_s5 + $0x8] sm:$0xff]  ;;  %v545_v56 = vld [vmem:[%s1408_s5 + $0x10] sm:$0xff]  ;;  %v546_v57 = vld [vmem:[%s1408_s5 + $0x18] sm:$0xff]  ;;  %v559_v60 = vpop.permute.xlu1 %558 }
 0x10e   :  { %v371_v63 = vmax.f32 %v345_v59, 0.0  ;;  %v1106_v59 = vmov 0.0  }
 0x10f   :  { %v370_v1 = vmax.f32 %v340_v62, 0.0  ;;  %v916_v2 = vpop.f32.mrb[14].mxu0  ;;  %1039 = vmatprep.subr.bf16.mxu1 %v1038_v61 }
 0x110   :  { %v355_v4 = vadd.f32 %v916_v2, %v158_v0  ;;  %v349_v5 = vpop.f32.mrb[15].mxu0  ;;  %1041 = vmatpush3.bf16.msra.mxu1 %v1038_v61  ;;  %v554_v61 = vpop.permute.xlu0 %553 }
 0x111   :  { %v1042_v6 = vpack.c.bf16 %v371_v63, %v370_v1  ;;  %v350_v7 = vadd.f32 %v349_v5, %v153_v3  ;;  %v569_v3 = vpop.permute.xlu1 %568 }
 0x112   :  { %v373_v8 = vmax.f32 %v355_v4, 0.0 }
 0x113   :  { %v372_v9 = vmax.f32 %v350_v7, 0.0  ;;  %1043 = vmatprep.subr.bf16.mxu1 %v1042_v6 }
 0x114   :  { %1045 = vmatpush3.bf16.msra.mxu1 %v1042_v6  ;;  %v564_v6 = vpop.permute.xlu0 %563 }
 0x115   :  { %v1046_v10 = vpack.c.bf16 %v373_v8, %v372_v9 }
 0x117   :  { %1047 = vmatprep.subr.bf16.mxu1 %v1046_v10 }
 0x118   :  { %1049 = vmatpush3.bf16.msra.mxu1 %v1046_v10 }
 0x11b   :  { %950 = vmatmul.mubr.f32.vlgmr.msra.gmra.mrb[0].mxu1 %v375_v11 }
 0x11c   :  { %952 = vmatprep.mubr.f32.mxu1 %v376_v12 }
 0x11f   :  { %953 = vmatmul.mubr.f32.gmra.mrb[2].mxu1 %v377_v13 }
 0x120   :  { %955 = vmatprep.mubr.f32.mxu1 %v378_v14  ;;  %v673_v14 = vld [vmem:[%s1410_s7] sm:$0x1] }
 0x123   :  { %956 = vmatmul.mubr.f32.gmra.mrb[4].mxu1 %v379_v15  ;;  %v680_v15 = vlaneseq }
 0x124   :  { %958 = vmatprep.mubr.f32.mxu1 %v380_v16 }
 0x125   :  { %v681_v16 = vshrl.u32 %v680_v15, 7 }
 0x127   :  { %959 = vmatmul.mubr.f32.gmra.mrb[6].mxu1 %v381_v17  ;;  %v682_v17 = vsub.s32 0, %v681_v16 }
 0x128   :  { %977 = vmatprep.mubr.msk.f32.mxu1 %vm571_vm2, %v543_v18  ;;  %v678_v18 = vpop.permute.xlu0 %677 }
 0x1ee   :  { %v951_v22 = vpop.f32.mrb[0].mxu1 }
 0x1ef   :  { %v502_v24 = vadd.f32 %v951_v22, %v398_v19  ;;  %v496_v25 = vpop.f32.mrb[1].mxu1  ;;  %v683_v19 = vrot.slane %v678_v18, %v682_v17 }
 0x1f0   :  { %v497_v26 = vadd.f32 %v496_v25, %v393_v20 }
 0x1f1   :  { %v536_v27 = vmax.f32 %v502_v24, 0.0 }
 0x1f2   :  { %v535_v28 = vmax.f32 %v497_v26, 0.0  ;;  %v954_v29 = vpop.f32.mrb[2].mxu1 }
 0x1f3   :  { %v512_v30 = vadd.f32 %v954_v29, %v408_v21  ;;  %v506_v31 = vpop.f32.mrb[3].mxu1 }
 0x1f4   :  { %v1050_v33 = vpack.c.bf16 %v536_v27, %v535_v28  ;;  %v507_v34 = vadd.f32 %v506_v31, %v403_v23 }
 0x1f5   :  { %v538_v36 = vmax.f32 %v512_v30, 0.0 }
 0x1f6   :  { %v537_v37 = vmax.f32 %v507_v34, 0.0  ;;  %v957_v38 = vpop.f32.mrb[4].mxu1  ;;  %1051 = vmatprep.subr.bf16.mxu1 %v1050_v33 }
 0x1f7   :  { %v522_v39 = vadd.f32 %v957_v38, %v418_v32  ;;  %v516_v40 = vpop.f32.mrb[5].mxu1  ;;  %1053 = vmatpush3.bf16.msra.mxu1 %v1050_v33 }
 0x1f8   :  { %v1054_v41 = vpack.c.bf16 %v538_v36, %v537_v37  ;;  %v517_v42 = vadd.f32 %v516_v40, %v413_v35 }
 0x1f9   :  { %v540_v43 = vmax.f32 %v522_v39, 0.0 }
 0x1fa   :  { %v539_v45 = vmax.f32 %v517_v42, 0.0  ;;  %v960_v46 = vpop.f32.mrb[6].mxu1  ;;  %1055 = vmatprep.subr.bf16.mxu1 %v1054_v41 }
 0x1fb   :  { %v532_v48 = vadd.f32 %v960_v46, %v428_v44  ;;  %v526_v49 = vpop.f32.mrb[7].mxu1  ;;  %1057 = vmatpush3.bf16.msra.mxu1 %v1054_v41 }
 0x1fc   :  { %v1058_v50 = vpack.c.bf16 %v540_v43, %v539_v45  ;;  %v527_v51 = vadd.f32 %v526_v49, %v423_v47 }
 0x1fd   :  { %v542_v52 = vmax.f32 %v532_v48, 0.0 }
 0x1fe   :  { %v541_v53 = vmax.f32 %v527_v51, 0.0  ;;  %1059 = vmatprep.subr.bf16.mxu1 %v1058_v50 }
 0x1ff   :  { %1061 = vmatpush3.bf16.msra.mxu1 %v1058_v50 }
 0x200   :  { %v1062_v54 = vpack.c.bf16 %v542_v52, %v541_v53 }
 0x202   :  { %1063 = vmatprep.subr.bf16.mxu1 %v1062_v54 }
 0x203   :  { %1065 = vmatpush3.bf16.msra.mxu1 %v1062_v54 }
 0x204   :  { %1066 = vmatprep.subr.bf16.mxu1 %v1104_v58 }
 0x206   :  { %978 = vmatmul.mubr.msk.f32.vlgmr.msra.gmra.mrb[8].mxu1 %vm571_vm2, %v544_v55 }
 0x207   :  { %980 = vmatprep.mubr.msk.f32.mxu1 %vm571_vm2, %v545_v56 }
 0x20a   :  { %981 = vmatmul.mubr.msk.f32.gmra.mrb[10].mxu1 %vm571_vm2, %v546_v57 }
 0x20b   :  { %991 = vmatprep.mubr.msk.f32.mxu1 %vm1105_vm3, %v1106_v59 }
 0x2d9   :  { %v979_v62 = vpop.f32.mrb[8].mxu1 }
 0x2da   :  { %v656_v63 = vadd.f32 %v979_v62, %v559_v60  ;;  %v650_v0 = vpop.f32.mrb[9].mxu1 }
 0x2db   :  { %v651_v1 = vadd.f32 %v650_v0, %v554_v61 }
 0x2dc   :  { %v670_v2 = vmax.f32 %v656_v63, 0.0 }
 0x2dd   :  { %v669_v4 = vmax.f32 %v651_v1, 0.0  ;;  %v982_v5 = vpop.f32.mrb[10].mxu1 }
 0x2de   :  { %v666_v7 = vadd.f32 %v982_v5, %v569_v3  ;;  %v660_v8 = vpop.f32.mrb[11].mxu1 }
 0x2df   :  { %v1067_v9 = vpack.c.bf16 %v670_v2, %v669_v4  ;;  %v661_v10 = vadd.f32 %v660_v8, %v564_v6 }
 0x2e0   :  { %v672_v11 = vmax.f32 %v666_v7, 0.0 }
 0x2e1   :  { %v671_v12 = vmax.f32 %v661_v10, 0.0  ;;  %1068 = vmatpush3.bf16.msra.mxu1 %v1067_v9 }
 0x2e2   :  { %1069 = vmatprep.subr.bf16.mxu1 %v1104_v58 }
 0x2e3   :  { %v1070_v13 = vpack.c.bf16 %v672_v11, %v671_v12 }
 0x2e5   :  { %1071 = vmatpush3.bf16.msra.mxu1 %v1070_v13 }
 0x2e8   :  { %992 = vmatmul.mubr.msk.f32.vlgmr.msra.gmra.mrb[12].mxu1 %vm684_vm4, %v673_v14 }
 0x3bb   :  { %v754_v20 = vpop.f32.mrb[12].mxu1 }
 0x3bc   :  { %v755_v21 = vadd.f32 %v754_v20, %v683_v19  ;;  %v993_v22 = vpop.f32.mrb[13].mxu1 }
 0x3be   :  { %v758_v23 = vmax.f32 %v755_v21, 0.0 }
 0x3c0   :  { %v759_v24 = vmin.f32 %v758_v23, 5.0 }
 0x3c2   :  { %760 = vst [vmem:[#allocation3] sm:$0x1] %v759_v24 }
 0x3c3   :  { %1090 = shalt.err (!%p1087_p4)
}
 0x3c4   :  { %s1091_s6 = scalar_lea.hbm %s1412_s9, 16 }
 0x3c5   :  { %p1092_p5 = scmp.ne.s32.totalorder %s1412_s9, %s1091_s6  ;;  %p1095_p6 = scmp.lt.u32.totalorder %s1091_s6, %s1412_s9 }
 0x3c7   :  { %p1097_p7 = pnand %p1095_p6, %p1092_p5 }
 0x3c9   :  { %1100 = shalt.err (!%p1097_p7)
}
 0x3ca   :  { %770 = dma.vmem_to_hbm [thread:$0]  %s768_s28, 16, %s1412_s9, [#allocation4]  }
 0x3cb   :  { %1101 = dma.done.wait [#allocation4], 16  }
 0x3cc   :  { %1102 = vsyncadd [#allocation4], 4294967280 }
 0x3cd   :  { %774 = vsyncpa [#allocation4], 1 }

</bundles_post_ra>
